<compile_context>
chip_gen: v7x
topology: tpu7x:2x2x1
jax: 0.10.0
libtpu: 0.0.40
codegen_flags: <defaults>
</compile_context>

<pallas_src>
import functools

import jax
import jax.numpy as jnp
from jax.experimental import pallas as pl
from jax.experimental.pallas import tpu as pltpu


# ----------------------------------------------------------------------------
# Tiling helpers
# ----------------------------------------------------------------------------
def _pick_row_tile(n_rows, n_cols, *, bytes_per_elem=4, target_bytes=2 << 20,
                   max_rows=2048):
    """Row-tile: ~target_bytes per (tile, n_cols) f32 block, multiple of 8,
    or the full extent when the whole array already fits in one block."""
    if n_rows <= 8:
        return n_rows
    t = target_bytes // max(1, n_cols * bytes_per_elem)
    t = max(8, min(max_rows, t))
    t = (t // 8) * 8
    if t >= n_rows:
        return n_rows
    return t


def _lane_pack_factor(n_rows, n_cols, *, lane=128):
    """Fold k rows into the lane axis when n_cols < 128 (lane-dense stores)."""
    if n_cols >= lane:
        return 1
    k = lane // n_cols
    while k > 1 and n_rows % k != 0:
        k -= 1
    return k


# ----------------------------------------------------------------------------
# Pallas kernels
# ----------------------------------------------------------------------------
def _fit_kernel(x_ref, min_ref, max_ref, *, n_rows, tile_rows, needs_mask):
    """Streaming column-wise min/max.  min_ref/max_ref are resident across the
    (reduction) grid axis; init on step 0, combine per-tile partials after."""
    i = pl.program_id(0)
    x = x_ref[...].astype(jnp.float32)

    if needs_mask:
        # Last block may overrun n_rows; neutralize padded rows.
        row = i * tile_rows + jax.lax.broadcasted_iota(jnp.int32, x.shape, 0)
        valid = row < n_rows
        x_min_src = jnp.where(valid, x, jnp.inf)
        x_max_src = jnp.where(valid, x, -jnp.inf)
    else:
        x_min_src = x
        x_max_src = x

    tile_min = jnp.min(x_min_src, axis=0, keepdims=True)
    tile_max = jnp.max(x_max_src, axis=0, keepdims=True)

    @pl.when(i == 0)
    def _():
        min_ref[...] = jnp.full(min_ref.shape, jnp.inf, min_ref.dtype)
        max_ref[...] = jnp.full(max_ref.shape, -jnp.inf, max_ref.dtype)

    min_ref[...] = jnp.minimum(min_ref[...], tile_min)
    max_ref[...] = jnp.maximum(max_ref[...], tile_max)


def _forward_kernel(x_ref, range_ref, offset_ref, o_ref):
    """o = x * range + offset  (offset = fmin - min*range), cast in-register."""
    x = x_ref[...].astype(jnp.float32)
    o_ref[...] = x * range_ref[...] + offset_ref[...]


# ----------------------------------------------------------------------------
# Python-side MinMaxScaler using the kernels
# ----------------------------------------------------------------------------
class MinMaxScalerPallas:
    def __init__(self, dim: int, feature_range: tuple = (-1.0, 1.0)):
        self.dim = dim
        self.feature_range = (float(feature_range[0]), float(feature_range[1]))
        # Buffers ("empty" -> zeros until .fit is called).
        self.min = jnp.zeros((1, dim), jnp.float32)
        self.max = jnp.zeros((1, dim), jnp.float32)
        self.range = jnp.zeros((1, dim), jnp.float32)
        self.offset = jnp.zeros((1, dim), jnp.float32)
        self.is_fit = False

    def _check_if_fit(self):
        if not self.is_fit:
            raise ValueError("Scaler has not been fit yet. Call .fit first.")

    # -------------------------------------------------------------- fit ----
    def fit(self, X):
        n, d = X.shape
        assert d == self.dim
        tile = _pick_row_tile(n, d)
        grid = (pl.cdiv(n, tile),)
        kernel = functools.partial(
            _fit_kernel, n_rows=n, tile_rows=tile, needs_mask=(n % tile != 0)
        )
        mn, mx = pl.pallas_call(
            kernel,
            out_shape=(
                jax.ShapeDtypeStruct((1, d), jnp.float32),
                jax.ShapeDtypeStruct((1, d), jnp.float32),
            ),
            grid=grid,
            in_specs=[pl.BlockSpec((tile, d), lambda i: (i, 0))],
            out_specs=(
                pl.BlockSpec((1, d), lambda i: (0, 0)),
                pl.BlockSpec((1, d), lambda i: (0, 0)),
            ),
            compiler_params=pltpu.CompilerParams(
                dimension_semantics=("arbitrary",)
            ),
        )(X)
        self.min, self.max = mn, mx

        fr0, fr1 = self.feature_range
        denom = self.max - self.min
        # Guard constant features (max == min) against inf/NaN range
        # (sklearn-style clamp; raw torch code would produce inf here).
        safe_denom = jnp.where(denom == 0.0, 1.0, denom)
        self.range = (fr1 - fr0) / safe_denom
        # Fold `min` into a single offset so forward is x*range + offset.
        self.offset = fr0 - self.min * self.range
        self.is_fit = True
        return self

    # ---------------------------------------------------------- forward ----
    def forward(self, X):
        self._check_if_fit()
        n, d = X.shape
        assert d == self.dim

        # Lane-dense layout: fold k rows into the lane axis when d < 128.
        k = _lane_pack_factor(n, d)
        if k > 1:
            Xp = X.reshape(n // k, k * d)
            rng = jnp.tile(self.range, (1, k))
            off = jnp.tile(self.offset, (1, k))
        else:
            Xp, rng, off = X, self.range, self.offset

        rows, dp = Xp.shape
        tile = _pick_row_tile(rows, dp)
        grid = (pl.cdiv(rows, tile),)

        out = pl.pallas_call(
            _forward_kernel,
            out_shape=jax.ShapeDtypeStruct((rows, dp), jnp.float32),
            grid=grid,
            in_specs=[
                pl.BlockSpec((tile, dp), lambda i: (i, 0)),
                pl.BlockSpec((1, dp), lambda i: (0, 0)),
                pl.BlockSpec((1, dp), lambda i: (0, 0)),
            ],
            out_specs=pl.BlockSpec((tile, dp), lambda i: (i, 0)),
            compiler_params=pltpu.CompilerParams(
                dimension_semantics=("parallel",)
            ),
        )(Xp, rng, off)
        return out.reshape(n, d)

    def transform(self, X):
        return self.forward(X)

    def inverse_transform(self, X):
        self._check_if_fit()
        # TODO(synk): inverse_transform kept as plain-JAX glue (same elementwise
        # structure as forward; not the requested hot path).
        return self.min + (X - self.feature_range[0]) / self.range


# ----------------------------------------------------------------------------
if __name__ == "__main__":
    key = jax.random.PRNGKey(0)
    k1, k2 = jax.random.split(key)

    # --- primary check: (n, d) = (8, 32), feature_range (-1, 1) -------------
    n, d = 8, 32
    X = jax.random.normal(k1, (n, d), dtype=jnp.float32) * 3.0 + 1.5

    scaler = MinMaxScalerPallas(dim=d, feature_range=(-1.0, 1.0))
    scaler.fit(X)
    Y = jax.block_until_ready(scaler.forward(X))

    mn_ref = X.min(axis=0)
    mx_ref = X.max(axis=0)
    rng_ref = (1.0 - (-1.0)) / jnp.where(mx_ref == mn_ref, 1.0, mx_ref - mn_ref)
    Y_ref = -1.0 + (X - mn_ref) * rng_ref
    assert jnp.allclose(Y, Y_ref, atol=1e-5, rtol=1e-5)

    # --- secondary check: odd feature width + different range ---------------
    n2, d2 = 24, 20
    X2 = jax.random.normal(k2, (n2, d2), dtype=jnp.float32) * 0.5 - 2.0

    scaler2 = MinMaxScalerPallas(dim=d2, feature_range=(0.0, 1.0))
    scaler2.fit(X2)
    Y2 = jax.block_until_ready(scaler2.forward(X2))

    mn2 = X2.min(axis=0)
    mx2 = X2.max(axis=0)
    rng2 = 1.0 / jnp.where(mx2 == mn2, 1.0, mx2 - mn2)
    Y2_ref = 0.0 + (X2 - mn2) * rng2
    assert jnp.allclose(Y2, Y2_ref, atol=1e-5, rtol=1e-5)

    print("KERNEL_OK")
</pallas_src>

<mosaic_0001>
module attributes {stable_mosaic.version = 11 : i64} {
  func.func @_fit_kernel(%arg0: i32, %arg1: memref<8x32xf32, #tpu.memory_space<vmem>>, %arg2: memref<1x32xf32, #tpu.memory_space<vmem>>, %arg3: memref<1x32xf32, #tpu.memory_space<vmem>>) attributes {dimension_semantics = [#tpu.dimension_semantics<arbitrary>], iteration_bounds = array<i64: 1>, scalar_prefetch = 0 : i64, scratch_operands = 0 : i64, tpu.core_type = #tpu.core_type<tc>, window_params = [{transform_indices = @transform_0, window_bounds = array<i64: 8, 32>}, {pipeline_mode = #tpu.pipeline_mode<synchronous>, transform_indices = @transform_1, window_bounds = array<i64: 1, 32>}, {pipeline_mode = #tpu.pipeline_mode<synchronous>, transform_indices = @transform_2, window_bounds = array<i64: 1, 32>}]} {
    %c0 = arith.constant 0 : index
    %c0_0 = arith.constant 0 : index
    %0 = vector.load %arg1[%c0, %c0_0] : memref<8x32xf32, #tpu.memory_space<vmem>>, vector<8x32xf32>
    %cst = arith.constant dense<0x7F800000> : vector<32xf32>
    %1 = vector.multi_reduction <minimumf>, %0, %cst [0] : vector<8x32xf32> to vector<32xf32>
    %2 = vector.shape_cast %1 : vector<32xf32> to vector<1x32xf32>
    %cst_1 = arith.constant dense<0xFF800000> : vector<32xf32>
    %3 = vector.multi_reduction <maximumf>, %0, %cst_1 [0] : vector<8x32xf32> to vector<32xf32>
    %4 = vector.shape_cast %3 : vector<32xf32> to vector<1x32xf32>
    %c0_i32 = arith.constant 0 : i32
    %5 = arith.cmpi eq, %arg0, %c0_i32 : i32
    %6 = arith.extui %5 : i1 to i32
    %c0_i32_2 = arith.constant 0 : i32
    %7 = arith.cmpi ne, %6, %c0_i32_2 : i32
    scf.if %7 {
      %cst_11 = arith.constant 0x7F800000 : f32
      %14 = vector.broadcast %cst_11 : f32 to vector<1x32xf32>
      %c0_12 = arith.constant 0 : index
      %c0_13 = arith.constant 0 : index
      %15 = vector.load %arg2[%c0_12, %c0_13] : memref<1x32xf32, #tpu.memory_space<vmem>>, vector<1x32xf32>
      tpu.vector_store %arg2[%c0_12, %c0_13], %14 {strides = array<i32>} : memref<1x32xf32, #tpu.memory_space<vmem>>, vector<1x32xf32>,
      %cst_14 = arith.constant 0xFF800000 : f32
      %16 = vector.broadcast %cst_14 : f32 to vector<1x32xf32>
      %c0_15 = arith.constant 0 : index
      %c0_16 = arith.constant 0 : index
      %17 = vector.load %arg3[%c0_15, %c0_16] : memref<1x32xf32, #tpu.memory_space<vmem>>, vector<1x32xf32>
      tpu.vector_store %arg3[%c0_15, %c0_16], %16 {strides = array<i32>} : memref<1x32xf32, #tpu.memory_space<vmem>>, vector<1x32xf32>,
    } else {
    }
    %c0_3 = arith.constant 0 : index
    %c0_4 = arith.constant 0 : index
    %8 = vector.load %arg2[%c0_3, %c0_4] : memref<1x32xf32, #tpu.memory_space<vmem>>, vector<1x32xf32>
    %9 = arith.minimumf %8, %2 : vector<1x32xf32>
    %c0_5 = arith.constant 0 : index
    %c0_6 = arith.constant 0 : index
    %10 = vector.load %arg2[%c0_5, %c0_6] : memref<1x32xf32, #tpu.memory_space<vmem>>, vector<1x32xf32>
    tpu.vector_store %arg2[%c0_5, %c0_6], %9 {strides = array<i32>} : memref<1x32xf32, #tpu.memory_space<vmem>>, vector<1x32xf32>,
    %c0_7 = arith.constant 0 : index
    %c0_8 = arith.constant 0 : index
    %11 = vector.load %arg3[%c0_7, %c0_8] : memref<1x32xf32, #tpu.memory_space<vmem>>, vector<1x32xf32>
    %12 = arith.maximumf %11, %4 : vector<1x32xf32>
    %c0_9 = arith.constant 0 : index
    %c0_10 = arith.constant 0 : index
    %13 = vector.load %arg3[%c0_9, %c0_10] : memref<1x32xf32, #tpu.memory_space<vmem>>, vector<1x32xf32>
    tpu.vector_store %arg3[%c0_9, %c0_10], %12 {strides = array<i32>} : memref<1x32xf32, #tpu.memory_space<vmem>>, vector<1x32xf32>,
    return
  }
  func.func @transform_0(%arg0: i32) -> (i32, i32) {
    %c0_i32 = arith.constant 0 : i32
    %c0_i32_0 = arith.constant 0 : i32
    return %arg0, %c0_i32 : i32, i32
  }
  func.func @transform_1(%arg0: i32) -> (i32, i32) {
    %c0_i32 = arith.constant 0 : i32
    %c0_i32_0 = arith.constant 0 : i32
    %c0_i32_1 = arith.constant 0 : i32
    return %c0_i32, %c0_i32_0 : i32, i32
  }
  func.func @transform_2(%arg0: i32) -> (i32, i32) {
    %c0_i32 = arith.constant 0 : i32
    %c0_i32_0 = arith.constant 0 : i32
    %c0_i32_1 = arith.constant 0 : i32
    return %c0_i32, %c0_i32_0 : i32, i32
  }
}

</mosaic_0001>

<bundles_post_ra>
// kernel: tpu_custom_call.1
= control target key start
LH: loop header
LB: loop body
LE: loop exit
PB: predicated region body
PF: predicated region fallthrough
CT: control target
= control target key end

     0   :  { %8 = vsyncpa [#allocation3], 0  ;;  %s228_s0 = inlined_call_operand.hbm [shape: f32[8,32], index: 0, kind: input, shape index: {}]   ;;  %s229_s1 = inlined_call_operand.hbm [shape: f32[1,32], index: 1, kind: output, shape index: {0}]   ;;  %s230_s2 = inlined_call_operand.hbm [shape: f32[1,32], index: 2, kind: output, shape index: {1}]  }
   0x1   :  { %9 = vsyncpa [#allocation4], 0 }
   0x2   :  { %10 = vsyncpa [#allocation7], 0  ;;  %s160_s9 = smov [#allocation2]   ;;  %s88_s13 = scalar_lea.hbm %s228_s0, 128 }
   0x3   :  { %s17_s10 = sshll.u32 %s160_s9, 4  ;;  %p89_p0 = scmp.ne.s32.totalorder %s228_s0, %s88_s13  ;;  %s18_s10 = int_to_ptr.vmem [resolvable:$true] %s17_s10 }
   0x4   :  { %p92_p1 = scmp.lt.u32.totalorder %s88_s13, %s228_s0 }
   0x6   :  { %p94_p2 = pnand %p92_p1, %p89_p0 }
   0x8   :  { %97 = shalt.err (!%p94_p2)
}
   0x9   :  { %s98_s18 = scalar_lea.vmem %s18_s10, 128  ;;  %p103_p4 = scmp.lt.s32.totalorder %s18_s10, %s18_s10 }
   0xa   :  { %p99_p3 = scmp.ne.s32.totalorder %s18_s10, %s98_s18  ;;  %p104_p5 = scmp.lt.s32.totalorder %s98_s18, %s98_s18 }
   0xc   :  { %p105_p6 = por %p104_p5, %p103_p4 }
   0xe   :  { %p106_p7 = pnand %p105_p6, %p99_p3 }
  0x10   :  { %109 = shalt.err (!%p106_p7)
}
  0x11   :  { %20 = dma.hbm_to_vmem [thread:$0]  %s228_s0, 128, %s18_s10, [#allocation3]  }
  0x12   :  { %154 = dma.done.wait [#allocation3], 128  }
  0x13   :  { %155 = vsyncadd [#allocation3], 4294967168  ;;  %vm44_vm0 = vcmask 253952   ;;  %v161_v0 = vmov inf   ;;  %v162_v1 = vmov -inf   ;;  %vm25_vm1 = vcmask 261120  }
  0x14   :  { %45 = vst.msk [vmem:[#allocation5] sm:$0x1] %vm44_vm0, %v161_v0  ;;  %46 = vst.msk [vmem:[#allocation6] sm:$0x1] %vm44_vm0, %v162_v1  ;;  %v24_v2 = vld [vmem:[#allocation2] sm:$0xff]  ;;  %s163_s0 = smov [#allocation5]  }
  0x15   :  { %v26_v3 = vsel %vm25_vm1, %v24_v2, inf  ;;  %v33_v4 = vsel %vm25_vm1, %v24_v2, -inf  ;;  %s60_s21 = sshll.u32 %s163_s0, 4  ;;  %s164_s22 = smov [#allocation6]   ;;  %s61_s21 = int_to_ptr.vmem [resolvable:$true] %s60_s21 }
  0x16   :  { %v27_v5 = vrot.slane %v26_v3, 4  ;;  %v34_v6 = vrot.slane %v33_v4, 4  ;;  %s70_s23 = sshll.u32 %s164_s22, 4  ;;  %s110_s24 = scalar_lea.vmem %s61_s21, 16  ;;  %s194_s23 = int_to_ptr.vmem [resolvable:$true] %s70_s23 }
  0x17   :  { %p111_p8 = scmp.ne.s32.totalorder %s61_s21, %s110_s24  ;;  %s114_s25 = scalar_lea.vmem %s61_s21, 32 }
  0x18   :  { %v28_v7 = vmin.f32 %v26_v3, %v27_v5  ;;  %v35_v8 = vmax.f32 %v33_v4, %v34_v6  ;;  %p115_p9 = scmp.lt.s32.totalorder %s61_s21, %s61_s21  ;;  %p116_p10 = scmp.lt.s32.totalorder %s114_s25, %s110_s24 }
  0x1a   :  { %v29_v9 = vrot.slane %v28_v7, 2  ;;  %v36_v10 = vrot.slane %v35_v8, 2  ;;  %p117_p11 = por %p116_p10, %p115_p9 }
  0x1b   :  { %v47_v15 = vld [vmem:[#allocation5] sm:$0x1]  ;;  %v51_v16 = vld [vmem:[#allocation6] sm:$0x1] }
  0x1c   :  { %v30_v11 = vmin.f32 %v28_v7, %v29_v9  ;;  %v37_v12 = vmax.f32 %v35_v8, %v36_v10  ;;  %p118_p12 = pnand %p117_p11, %p111_p8 }
  0x1e   :  { %v31_v13 = vrot.slane %v30_v11, 1  ;;  %v38_v14 = vrot.slane %v37_v12, 1 }
  0x20   :  { %v32_v17 = vmin.f32 %v30_v11, %v31_v13  ;;  %v39_v18 = vmax.f32 %v37_v12, %v38_v14 }
  0x22   :  { %v48_v19 = vmin.f32 %v47_v15, %v32_v17  ;;  %v52_v20 = vmax.f32 %v51_v16, %v39_v18 }
  0x24   :  { %50 = vst.msk [vmem:[#allocation5] sm:$0x1] %vm44_vm0, %v48_v19  ;;  %53 = vst.msk [vmem:[#allocation6] sm:$0x1] %vm44_vm0, %v52_v20 }
  0x25   :  { %121 = shalt.err (!%p118_p12)
}
  0x26   :  { %s122_s28 = scalar_lea.hbm %s229_s1, 16 }
  0x27   :  { %p123_p13 = scmp.ne.s32.totalorder %s229_s1, %s122_s28  ;;  %p126_p0 = scmp.lt.u32.totalorder %s122_s28, %s229_s1 }
  0x29   :  { %p128_p1 = pnand %p126_p0, %p123_p13 }
  0x2b   :  { %131 = shalt.err (!%p128_p1)
}
  0x2c   :  { %63 = dma.vmem_to_hbm [thread:$0]  %s61_s21, 16, %s229_s1, [#allocation4]  }
  0x2d   :  { %s132_s7 = scalar_lea.vmem %s194_s23, 16  ;;  %s136_s8 = scalar_lea.vmem %s194_s23, 32 }
  0x2e   :  { %p133_p2 = scmp.ne.s32.totalorder %s194_s23, %s132_s7  ;;  %p137_p3 = scmp.lt.s32.totalorder %s194_s23, %s194_s23 }
  0x2f   :  { %p138_p4 = scmp.lt.s32.totalorder %s136_s8, %s132_s7 }
  0x31   :  { %p139_p5 = por %p138_p4, %p137_p3 }
  0x33   :  { %p140_p6 = pnand %p139_p5, %p133_p2 }
  0x35   :  { %143 = shalt.err (!%p140_p6)
}
  0x36   :  { %s144_s11 = scalar_lea.hbm %s230_s2, 16 }
  0x37   :  { %p145_p7 = scmp.ne.s32.totalorder %s230_s2, %s144_s11  ;;  %p148_p8 = scmp.lt.u32.totalorder %s144_s11, %s230_s2 }
  0x39   :  { %p150_p9 = pnand %p148_p8, %p145_p7 }
  0x3b   :  { %153 = shalt.err (!%p150_p9)
}
  0x3c   :  { %73 = dma.vmem_to_hbm [thread:$0]  %s194_s23, 16, %s230_s2, [#allocation7]  }
  0x3d   :  { %156 = dma.done.wait [#allocation4], 16  }
  0x3e   :  { %157 = vsyncadd [#allocation4], 4294967280 }
  0x3f   :  { %158 = dma.done.wait [#allocation7], 16  }
  0x40   :  { %159 = vsyncadd [#allocation7], 4294967280 }
  0x41   :  { %80 = vsyncpa [#allocation3], 1 }
  0x42   :  { %81 = vsyncpa [#allocation4], 1 }
  0x43   :  { %82 = vsyncpa [#allocation7], 1 }

</bundles_post_ra>
